<compile_context>
chip_gen: v7x
topology: tpu7x:2x2x1
jax: 0.10.0
libtpu: 0.0.40
codegen_flags: <defaults>
</compile_context>

<pallas_src>
import functools

import numpy as np
import jax
import jax.numpy as jnp
from jax.experimental import pallas as pl
from jax.experimental.pallas import tpu as pltpu


# ----------------------------- base functions ------------------------------
class BaseFunction:
    def __init__(self, key, arity, fn):
        self.key = key
        self.arity = arity
        self._fn = fn

    def forward(self, *args):
        return self._fn(*args)


IDE = BaseFunction("ide", 1, lambda a: a)
EXP = BaseFunction("exp", 1, lambda a: jnp.exp(a))
SQR = BaseFunction("sqr", 1, lambda a: a * a)
ADD = BaseFunction("add", 2, lambda a, b: a + b)
MUL = BaseFunction("mul", 2, lambda a, b: a * b)

_COMMUTATIVE = {"add", "mul"}


# --------------------- structural mirror of __init__ -----------------------
class OccamNetParams:
    """Mirror of the PyTorch OccamNet.__init__ (weights = ones, float64)."""

    def __init__(self, input_dims, output_dims, activation_layers, temperatures,
                 skip_connections=True, is_none=False):
        self.input_dim = len(input_dims)
        self.output_dim = len(output_dims)
        self.activation_layers = activation_layers
        self.temperatures = temperatures
        self.skip_connections = skip_connections
        self.is_none = int(is_none)
        self.w_layers = []
        current_dim = self.input_dim + self.is_none
        for a_layer in activation_layers[:-1]:
            arity_layer = sum(f.arity for f in a_layer)
            self.w_layers.append(np.ones((arity_layer, current_dim), dtype=np.float64))
            nb_bases = len(a_layer)
            if skip_connections:
                current_dim += nb_bases
            else:
                current_dim = nb_bases
        if skip_connections:
            current_dim -= self.is_none
        self.w_layers.append(np.ones((self.output_dim, current_dim), dtype=np.float64))
        self.path_to_a_index, self.index_to_path_index = self._index_path_matrices()

    def _index_path_matrices(self):
        path_to_a_index, index_to_path_index = [], []
        j = 0
        index_layer = []
        for _ in range(self.input_dim + self.is_none):
            index_layer.append(j)
            j += 1
        path_to_a_index.append(index_layer)
        for a_layer in self.activation_layers:
            index_layer, index_to_path_layer, k = [], [], 0
            for base_f in a_layer:
                index_to_path_layer.append(list(range(k, k + base_f.arity)))
                k += base_f.arity
                index_layer.append(j)
                j += 1
            path_to_a_index.append(index_layer)
            index_to_path_index.append(index_to_path_layer)
        return path_to_a_index, index_to_path_index


# -------------------- deterministic path sampling (host) -------------------
# TODO(synk): torch.distributions.Categorical sampling is host-side Python
# control flow (it builds the symbolic path structure) — kept outside the
# kernel, exactly like the PyTorch reference where sampling is separate from
# forward().
def _softmax(w, T):
    z = w / T
    z = z - z.max(axis=-1, keepdims=True)
    e = np.exp(z)
    return e / e.sum(axis=-1, keepdims=True)


def _find_value_index(matrix, value):
    for i, row in enumerate(matrix):
        for j, element in enumerate(row):
            if element == value:
                return i, j
    return None


def _get_the_path(net, rng, the_sub_path, top_key):
    layer_index, input_index = _find_value_index(net.path_to_a_index, top_key)
    if layer_index == 0:
        the_sub_path.append(input_index)
        return
    base_f = net.activation_layers[layer_index - 1][input_index]
    the_sub_path.append(base_f)
    rows = net.index_to_path_index[layer_index - 1][input_index]
    T = net.temperatures[layer_index - 1]
    w = net.w_layers[layer_index - 1][rows]
    p = _softmax(w, T)
    keys = [int(rng.choice(p.shape[1], p=p[r])) for r in range(p.shape[0])]
    for k in keys:
        _get_the_path(net, rng, the_sub_path, k)


def sample_paths(net, rng, nb_sampled_paths):
    the_paths = []
    last_T = net.temperatures[-1]
    last_a_layer = net.activation_layers[-1]
    last_p = _softmax(net.w_layers[-1], last_T)
    for _ in range(nb_sampled_paths):
        the_path = [[a] for a in last_a_layer]
        initial_keys = [int(rng.choice(last_p.shape[1], p=last_p[r]))
                        for r in range(last_p.shape[0])]
        for sub_path, k in zip(the_path, initial_keys):
            _get_the_path(net, rng, sub_path, k)
        the_paths.append(the_path)
    return the_paths


# ------------------------------ Pallas kernel -------------------------------
def _forward_kernel(the_paths, x_ref, y_ref):
    """Static unroll of OccamNet.forward's stack machine.

    Each stack value is a (tile_rows, 128) VMEM tile; base functions are fused
    element-wise VPU/EUP ops.  A trace-time memo table deduplicates input
    loads and identical sub-expressions across sub-paths and samples
    (commutative add/mul are canonicalized).
    """
    memo = {}

    def load_input(s, element):
        key = ("in", s, element)
        if key not in memo:
            memo[key] = x_ref[s, element, :, :]          # (tile_rows, 128) tile
        return key, memo[key]

    for s, the_path in enumerate(the_paths):
        for o, sub_path in enumerate(the_path):
            stack = []          # list of (cse_key, jnp value)
            output = None
            for element in reversed(sub_path):
                if isinstance(element, int):
                    stack.append(load_input(s, element))
                elif element.key == "ide":
                    # Matches the reference: peeks (does not pop) the stack top.
                    output = stack[-1][1]
                else:
                    args = list(reversed(stack[-element.arity:]))
                    stack = stack[:-element.arity]
                    arg_keys = tuple(k for k, _ in args)
                    if element.key in _COMMUTATIVE:
                        ck = (element.key,) + tuple(sorted(arg_keys, key=repr))
                    else:
                        ck = (element.key,) + arg_keys
                    if ck not in memo:
                        memo[ck] = element.forward(*(v for _, v in args))
                    stack.append((ck, memo[ck]))
            assert output is not None, (
                "sub_path has no terminal 'ide' element (last activation layer "
                "must be identity, as the reference assumes)")
            y_ref[s, o, :, :] = output


# -------------------------- tiling / VMEM budgeting --------------------------
def _count_memo_ops(the_paths):
    """Trace-free structural pass: number of distinct CSE'd intermediates the
    kernel body will stage (matches the kernel's canonicalization)."""
    memo = set()
    for s, the_path in enumerate(the_paths):
        for sub_path in the_path:
            stack = []
            for element in reversed(sub_path):
                if isinstance(element, int):
                    stack.append(("in", s, element))
                elif element.key == "ide":
                    pass                                   # peek, nothing staged
                else:
                    args = list(reversed(stack[-element.arity:]))
                    stack = stack[:-element.arity]
                    if element.key in _COMMUTATIVE:
                        ck = (element.key,) + tuple(sorted(args, key=repr))
                    else:
                        ck = (element.key,) + tuple(args)
                    memo.add(ck)
                    stack.append(ck)
    return len(memo)


def _default_vmem_limit():
    """~75% of physical per-core VMEM: ≈48 MiB on v7x (64 MiB/TC), ≈96 MiB on
    v5e/v6e (128 MiB).  Leaves headroom for compiler-internal scratch and the
    double-buffered pipeline buffers."""
    phys = None
    try:
        info = pltpu.get_tpu_info()
        phys = getattr(info, "vmem_capacity_bytes", None)
    except Exception:
        phys = None
    if not phys:
        phys = 64 * 1024 * 1024            # v7x per-TC size: safe lower bound
    return max(32 * 1024 * 1024, int(phys) * 3 // 4)


def _select_tile_rows(S, in_dim, n_out, n_rows, n_memo, vmem_limit, itemsize):
    """Pick tile_rows (multiple of 8) from the VMEM budget.

    Per tile-row cost: double-buffered input + output blocks plus the staged
    CSE intermediates (Mosaic keeps element-wise temporaries in VMEM) plus a
    little slack.
    """
    lane = 128
    per_row = lane * itemsize * (2 * S * in_dim + 2 * S * n_out + n_memo + 4)
    budget = int(vmem_limit * 0.8)

    # Small problem: the whole thing fits -> one full-extent block, grid=(1,).
    if per_row * n_rows <= budget:
        return n_rows

    max_rows = max(8, (budget // per_row) // 8 * 8)
    tile_rows = min(max_rows, 512)          # 512 rows = 256 KiB per staged value

    # Keep >= ~8 grid steps so both v7x TensorCores get several iterations and
    # the double-buffered DMAs have compute to hide behind.
    min_steps = 8
    if -(-n_rows // tile_rows) < min_steps:
        tile_rows = min(max_rows, max(8, ((-(-n_rows // min_steps)) + 7) // 8 * 8))
    return tile_rows


def occamnet_forward(x, the_paths, *, tile_rows=None, vmem_limit_bytes=None):
    """x: (S, input_dim, D) float32.  Returns (S, output_dim, D).

    D is padded only to a multiple of 128 (lane width); the data axis is tiled
    with a pl.cdiv grid and a partial last block, so padding is independent of
    tile size.
    """
    S, in_dim, D = x.shape
    n_out = len(the_paths[0])
    lane = 128

    D_pad = -(-D // lane) * lane
    if D_pad != D:
        # Minimal pad to lane width; only costs an extra pass when D % 128 != 0.
        x = jnp.pad(x, ((0, 0), (0, 0), (0, D_pad - D)))
    n_rows = D_pad // lane

    # Lane/sublane-dense layout: every per-(s, element) value is (tile_rows, 128).
    x4 = x.reshape(S, in_dim, n_rows, lane)

    if vmem_limit_bytes is None:
        vmem_limit_bytes = _default_vmem_limit()
    if tile_rows is None:
        n_memo = _count_memo_ops(the_paths)
        tile_rows = _select_tile_rows(S, in_dim, n_out, n_rows, n_memo,
                                      vmem_limit_bytes, x.dtype.itemsize)
    tile_rows = int(tile_rows)
    if tile_rows >= n_rows:
        tile_rows = n_rows                  # full extent: no (8,128) constraint
    else:
        tile_rows = max(8, (tile_rows // 8) * 8)

    grid = (pl.cdiv(n_rows, tile_rows),)

    # TODO(synk): for large S with many distinct path structures, group samples
    # by path hash and emit one body / S-blocked grid axis per structure so the
    # block VMEM and program size don't grow linearly in S.
    # TODO(synk): on v6e/v7x a bf16 I/O variant (keep tile_rows a multiple of 16)
    # would halve HBM traffic; kept f32 here to match the reference numerics
    # exactly (and v5e has no bf16 VPU/EUP).
    kernel = functools.partial(_forward_kernel, the_paths)
    y4 = pl.pallas_call(
        kernel,
        out_shape=jax.ShapeDtypeStruct((S, n_out, n_rows, lane), x.dtype),
        grid=grid,
        in_specs=[pl.BlockSpec((S, in_dim, tile_rows, lane),
                               lambda i: (0, 0, i, 0))],
        out_specs=pl.BlockSpec((S, n_out, tile_rows, lane),
                               lambda i: (0, 0, i, 0)),
        compiler_params=pltpu.CompilerParams(
            # Data-parallel over the D axis: uses v7x's 2nd TensorCore, harmless
            # on v5e/v6e.
            dimension_semantics=("parallel",),
            vmem_limit_bytes=int(vmem_limit_bytes),
        ),
    )(x4)

    y = y4.reshape(S, n_out, D_pad)
    if D_pad != D:
        y = y[:, :, :D]
    return y


# ----------------------------- numpy reference ------------------------------
def occamnet_forward_ref(x, the_paths):
    x = np.asarray(x)
    S, _, D = x.shape
    n_out = len(the_paths[0])
    y = np.zeros((S, n_out, D), dtype=x.dtype)
    for s, the_path in enumerate(the_paths):
        for o, sub_path in enumerate(the_path):
            stored_inputs = []
            output = None
            for element in reversed(sub_path):
                if isinstance(element, int):
                    stored_inputs.append(x[s, element, :])
                elif element.key == "ide":
                    output = stored_inputs[-1]
                else:
                    args = list(reversed(stored_inputs[-element.arity:]))
                    stored_inputs = stored_inputs[:-element.arity]
                    stored_inputs.append(np.asarray(element.forward(*args)))
            y[s, o, :] = np.asarray(output).reshape(-1)
    return y


# ---------------------------------- main ------------------------------------
if __name__ == "__main__":
    input_dims = ["x0", "x1", "x2"]          # input_dim = 3
    output_dims = ["y0", "y1"]               # output_dim = 2
    activation_layers = [[EXP, SQR, ADD, MUL], [IDE, IDE]]
    temperatures = [1.0, 1.0]

    net = OccamNetParams(input_dims, output_dims, activation_layers,
                         temperatures, skip_connections=True, is_none=False)

    S = 2        # nb_sampled_paths
    D = 2048     # vectorized data points (16 lane-rows -> single full block here)

    rng = np.random.default_rng(0)
    the_paths = sample_paths(net, rng, S)

    key = jax.random.PRNGKey(0)
    x = jax.random.normal(key, (S, len(input_dims), D), dtype=jnp.float32)

    y = occamnet_forward(x, the_paths)
    y = jax.block_until_ready(y)

    y_ref = occamnet_forward_ref(x, the_paths)
    assert y.shape == (S, len(output_dims), D)
    assert np.allclose(np.asarray(y), y_ref, rtol=1e-4, atol=1e-4), "mismatch vs reference"

    print("KERNEL_OK")
</pallas_src>

<mosaic_0001>
module attributes {stable_mosaic.version = 11 : i64} {
  func.func @_forward_kernel(%arg0: i32, %arg1: memref<2x3x16x128xf32, #tpu.memory_space<vmem>>, %arg2: memref<2x2x16x128xf32, #tpu.memory_space<vmem>>) attributes {dimension_semantics = [#tpu.dimension_semantics<parallel>], iteration_bounds = array<i64: 1>, scalar_prefetch = 0 : i64, scratch_operands = 0 : i64, tpu.core_type = #tpu.core_type<tc>, window_params = [{transform_indices = @transform_0, window_bounds = array<i64: 2, 3, 16, 128>}, {transform_indices = @transform_1, window_bounds = array<i64: 2, 2, 16, 128>}]} {
    %c0 = arith.constant 0 : index
    %c0_0 = arith.constant 0 : index
    %c0_1 = arith.constant 0 : index
    %c0_2 = arith.constant 0 : index
    %0 = vector.load %arg1[%c0, %c0_0, %c0_1, %c0_2] : memref<2x3x16x128xf32, #tpu.memory_space<vmem>>, vector<1x1x16x128xf32>
    %1 = vector.shape_cast %0 : vector<1x1x16x128xf32> to vector<16x128xf32>
    %2 = arith.mulf %1, %1 : vector<16x128xf32>
    %c0_3 = arith.constant 0 : index
    %c0_4 = arith.constant 0 : index
    %c0_5 = arith.constant 0 : index
    %c0_6 = arith.constant 0 : index
    %3 = vector.load %arg2[%c0_3, %c0_4, %c0_5, %c0_6] : memref<2x2x16x128xf32, #tpu.memory_space<vmem>>, vector<1x1x16x128xf32>
    %4 = vector.shape_cast %3 : vector<1x1x16x128xf32> to vector<16x128xf32>
    %5 = vector.shape_cast %2 : vector<16x128xf32> to vector<1x1x16x128xf32>
    tpu.vector_store %arg2[%c0_3, %c0_4, %c0_5, %c0_6], %5 {strides = array<i32>} : memref<2x2x16x128xf32, #tpu.memory_space<vmem>>, vector<1x1x16x128xf32>,
    %c0_7 = arith.constant 0 : index
    %c1 = arith.constant 1 : index
    %c0_8 = arith.constant 0 : index
    %c0_9 = arith.constant 0 : index
    %6 = vector.load %arg1[%c0_7, %c1, %c0_8, %c0_9] : memref<2x3x16x128xf32, #tpu.memory_space<vmem>>, vector<1x1x16x128xf32>
    %7 = vector.shape_cast %6 : vector<1x1x16x128xf32> to vector<16x128xf32>
    %c0_10 = arith.constant 0 : index
    %c1_11 = arith.constant 1 : index
    %c0_12 = arith.constant 0 : index
    %c0_13 = arith.constant 0 : index
    %8 = vector.load %arg2[%c0_10, %c1_11, %c0_12, %c0_13] : memref<2x2x16x128xf32, #tpu.memory_space<vmem>>, vector<1x1x16x128xf32>
    %9 = vector.shape_cast %8 : vector<1x1x16x128xf32> to vector<16x128xf32>
    %10 = vector.shape_cast %7 : vector<16x128xf32> to vector<1x1x16x128xf32>
    tpu.vector_store %arg2[%c0_10, %c1_11, %c0_12, %c0_13], %10 {strides = array<i32>} : memref<2x2x16x128xf32, #tpu.memory_space<vmem>>, vector<1x1x16x128xf32>,
    %c1_14 = arith.constant 1 : index
    %c0_15 = arith.constant 0 : index
    %c0_16 = arith.constant 0 : index
    %c0_17 = arith.constant 0 : index
    %11 = vector.load %arg1[%c1_14, %c0_15, %c0_16, %c0_17] : memref<2x3x16x128xf32, #tpu.memory_space<vmem>>, vector<1x1x16x128xf32>
    %12 = vector.shape_cast %11 : vector<1x1x16x128xf32> to vector<16x128xf32>
    %c1_18 = arith.constant 1 : index
    %c0_19 = arith.constant 0 : index
    %c0_20 = arith.constant 0 : index
    %c0_21 = arith.constant 0 : index
    %13 = vector.load %arg2[%c1_18, %c0_19, %c0_20, %c0_21] : memref<2x2x16x128xf32, #tpu.memory_space<vmem>>, vector<1x1x16x128xf32>
    %14 = vector.shape_cast %13 : vector<1x1x16x128xf32> to vector<16x128xf32>
    %15 = vector.shape_cast %12 : vector<16x128xf32> to vector<1x1x16x128xf32>
    tpu.vector_store %arg2[%c1_18, %c0_19, %c0_20, %c0_21], %15 {strides = array<i32>} : memref<2x2x16x128xf32, #tpu.memory_space<vmem>>, vector<1x1x16x128xf32>,
    %c1_22 = arith.constant 1 : index
    %c1_23 = arith.constant 1 : index
    %c0_24 = arith.constant 0 : index
    %c0_25 = arith.constant 0 : index
    %16 = vector.load %arg1[%c1_22, %c1_23, %c0_24, %c0_25] : memref<2x3x16x128xf32, #tpu.memory_space<vmem>>, vector<1x1x16x128xf32>
    %17 = vector.shape_cast %16 : vector<1x1x16x128xf32> to vector<16x128xf32>
    %c1_26 = arith.constant 1 : index
    %c2 = arith.constant 2 : index
    %c0_27 = arith.constant 0 : index
    %c0_28 = arith.constant 0 : index
    %18 = vector.load %arg1[%c1_26, %c2, %c0_27, %c0_28] : memref<2x3x16x128xf32, #tpu.memory_space<vmem>>, vector<1x1x16x128xf32>
    %19 = vector.shape_cast %18 : vector<1x1x16x128xf32> to vector<16x128xf32>
    %20 = arith.addf %19, %17 : vector<16x128xf32>
    %c1_29 = arith.constant 1 : index
    %c1_30 = arith.constant 1 : index
    %c0_31 = arith.constant 0 : index
    %c0_32 = arith.constant 0 : index
    %21 = vector.load %arg2[%c1_29, %c1_30, %c0_31, %c0_32] : memref<2x2x16x128xf32, #tpu.memory_space<vmem>>, vector<1x1x16x128xf32>
    %22 = vector.shape_cast %21 : vector<1x1x16x128xf32> to vector<16x128xf32>
    %23 = vector.shape_cast %20 : vector<16x128xf32> to vector<1x1x16x128xf32>
    tpu.vector_store %arg2[%c1_29, %c1_30, %c0_31, %c0_32], %23 {strides = array<i32>} : memref<2x2x16x128xf32, #tpu.memory_space<vmem>>, vector<1x1x16x128xf32>,
    return
  }
  func.func @transform_0(%arg0: i32) -> (i32, i32, i32, i32) {
    %c0_i32 = arith.constant 0 : i32
    %c0_i32_0 = arith.constant 0 : i32
    %c0_i32_1 = arith.constant 0 : i32
    %c0_i32_2 = arith.constant 0 : i32
    return %c0_i32, %c0_i32_0, %arg0, %c0_i32_1 : i32, i32, i32, i32
  }
  func.func @transform_1(%arg0: i32) -> (i32, i32, i32, i32) {
    %c0_i32 = arith.constant 0 : i32
    %c0_i32_0 = arith.constant 0 : i32
    %c0_i32_1 = arith.constant 0 : i32
    %c0_i32_2 = arith.constant 0 : i32
    return %c0_i32, %c0_i32_0, %arg0, %c0_i32_1 : i32, i32, i32, i32
  }
}

</mosaic_0001>

<bundles_post_ra>
// kernel: tpu_custom_call.1
= control target key start
LH: loop header
LB: loop body
LE: loop exit
PB: predicated region body
PF: predicated region fallthrough
CT: control target
= control target key end

     0   :  { %6 = vsyncpa [#allocation3], 0  ;;  %s165_s0 = inlined_call_operand.hbm [shape: f32[2,3,16,128], index: 0, kind: input, shape index: {}]   ;;  %s166_s1 = inlined_call_operand.hbm [shape: f32[2,2,16,128], index: 1, kind: output, shape index: {}]  }
   0x1   :  { %7 = vsyncpa [#allocation4], 0  ;;  %s121_s6 = smov [#allocation2]   ;;  %s73_s10 = scalar_lea.hbm %s165_s0, 1536 }
   0x2   :  { %s13_s7 = sshll.u32 %s121_s6, 4  ;;  %p74_p0 = scmp.ne.s32.totalorder %s165_s0, %s73_s10  ;;  %s14_s7 = int_to_ptr.vmem [resolvable:$true] %s13_s7 }
   0x3   :  { %p77_p1 = scmp.lt.u32.totalorder %s73_s10, %s165_s0 }
   0x5   :  { %p79_p2 = pnand %p77_p1, %p74_p0 }
   0x7   :  { %82 = shalt.err (!%p79_p2)
}
   0x8   :  { %s83_s15 = scalar_lea.vmem %s14_s7, 1536  ;;  %p88_p4 = scmp.lt.s32.totalorder %s14_s7, %s14_s7 }
   0x9   :  { %p84_p3 = scmp.ne.s32.totalorder %s14_s7, %s83_s15  ;;  %p89_p5 = scmp.lt.s32.totalorder %s83_s15, %s83_s15 }
   0xb   :  { %p90_p6 = por %p89_p5, %p88_p4 }
   0xd   :  { %p91_p7 = pnand %p90_p6, %p84_p3 }
   0xf   :  { %94 = shalt.err (!%p91_p7)
}
  0x10   :  { %s122_s16 = smov 128   ;;  %s123_s17 = smov 8  }
  0x11   :  { %19 = dma.hbm_to_vmem [thread:$0]  %s165_s0, 1536, %s14_s7, [#allocation3], %s122_s16, %s122_s16, %s123_s17  }
  0x12   :  { %117 = dma.done.wait [#allocation3], 1536  }
  0x13   :  { %118 = vsyncadd [#allocation3], 4294965760  ;;  %v23_v0 = vld [vmem:[#allocation2] sm:$0xff]  ;;  %v24_v1 = vld [vmem:[#allocation2 + $0x8] sm:$0xff]  ;;  %s124_s20 = smov [#allocation5]  }
  0x14   :  { %v30_v2 = vld [vmem:[#allocation2 + $0x10] sm:$0xff]  ;;  %v25_v3 = vmul.f32 %v23_v0, %v23_v0  ;;  %v26_v4 = vmul.f32 %v24_v1, %v24_v1  ;;  %v31_v5 = vld [vmem:[#allocation2 + $0x18] sm:$0xff]  ;;  %s57_s21 = sshll.u32 %s124_s20, 4  ;;  %v42_v8 = vld [vmem:[#allocation2 + $0x40] sm:$0xff]  ;;  %s58_s21 = int_to_ptr.vmem [resolvable:$true] %s57_s21 }
  0x15   :  { %33 = vst [vmem:[#allocation5 + $0x10] sm:$0xff] %v30_v2  ;;  %v36_v6 = vld [vmem:[#allocation2 + $0x30] sm:$0xff]  ;;  %v37_v7 = vld [vmem:[#allocation2 + $0x38] sm:$0xff]  ;;  %34 = vst [vmem:[#allocation5 + $0x18] sm:$0xff] %v31_v5  ;;  %s95_s0 = scalar_lea.vmem %s58_s21, 1024  ;;  %p100_p9 = scmp.lt.s32.totalorder %s58_s21, %s58_s21 }
  0x16   :  { %39 = vst [vmem:[#allocation5 + $0x20] sm:$0xff] %v36_v6  ;;  %40 = vst [vmem:[#allocation5 + $0x28] sm:$0xff] %v37_v7  ;;  %v45_v9 = vld [vmem:[#allocation2 + $0x50] sm:$0xff]  ;;  %v43_v10 = vld [vmem:[#allocation2 + $0x48] sm:$0xff]  ;;  %p96_p8 = scmp.ne.s32.totalorder %s58_s21, %s95_s0  ;;  %p101_p10 = scmp.lt.s32.totalorder %s95_s0, %s95_s0 }
  0x17   :  { %27 = vst [vmem:[#allocation5] sm:$0xff] %v25_v3  ;;  %28 = vst [vmem:[#allocation5 + $0x8] sm:$0xff] %v26_v4  ;;  %v47_v11 = vadd.f32 %v45_v9, %v42_v8  ;;  %v46_v12 = vld [vmem:[#allocation2 + $0x58] sm:$0xff] }
  0x18   :  { %v48_v13 = vadd.f32 %v46_v12, %v43_v10  ;;  %p102_p11 = por %p101_p10, %p100_p9 }
  0x19   :  { %50 = vst [vmem:[#allocation5 + $0x30] sm:$0xff] %v47_v11 }
  0x1a   :  { %51 = vst [vmem:[#allocation5 + $0x38] sm:$0xff] %v48_v13  ;;  %p103_p12 = pnand %p102_p11, %p96_p8 }
  0x1c   :  { %106 = shalt.err (!%p103_p12)
}
  0x1d   :  { %s107_s24 = scalar_lea.hbm %s166_s1, 1024 }
  0x1e   :  { %p108_p13 = scmp.ne.s32.totalorder %s166_s1, %s107_s24  ;;  %p111_p0 = scmp.lt.u32.totalorder %s107_s24, %s166_s1 }
  0x20   :  { %p113_p1 = pnand %p111_p0, %p108_p13 }
  0x22   :  { %116 = shalt.err (!%p113_p1)
}
  0x23   :  { %63 = dma.vmem_to_hbm [thread:$0]  %s58_s21, 1024, %s166_s1, [#allocation4], %s122_s16, %s122_s16, %s123_s17  }
  0x24   :  { %119 = dma.done.wait [#allocation4], 1024  }
  0x25   :  { %120 = vsyncadd [#allocation4], 4294966272 }
  0x26   :  { %67 = vsyncpa [#allocation3], 1 }
  0x27   :  { %68 = vsyncpa [#allocation4], 1 }

</bundles_post_ra>
